<compile_context>
chip_gen: v6e
topology: v6e:2x2x1
jax: 0.10.0
libtpu: 0.0.40
codegen_flags: <defaults>
</compile_context>

<pallas_src>
import functools

import jax
import jax.numpy as jnp
from jax.experimental import pallas as pl
from jax.experimental.pallas import tpu as pltpu


def _loss_kernel(probs_ref, tgt_ref, out_ref, *, aligned):
    """Accumulate sum of log p(target) for one (row_tile, v_tile) block.

    probs_ref: (row_tile, v_tile) log-probs (native dtype, upcast here)
    tgt_ref:   (row_tile, 1) int32 targets, -1 for invalid/padded rows
    out_ref:   (8, 128) f32 partial-sum block, resident across the vocab axis
    """
    j = pl.program_id(1)                 # vocab-tile index (reduction)
    row_tile, v_tile = probs_ref.shape   # static

    @pl.when(j == 0)
    def _():
        out_ref[...] = jnp.zeros_like(out_ref)

    probs = probs_ref[...].astype(jnp.float32)          # upcast after load

    # Shift only the (row_tile, 1) target column by the tile offset; the big
    # (row_tile, v_tile) lane iota stays grid-invariant (hoistable by Mosaic).
    tgt_local = tgt_ref[...] - j * v_tile                # (row_tile, 1)
    lane = jax.lax.broadcasted_iota(jnp.int32, (row_tile, v_tile), 1)
    hit = lane == tgt_local        # -1 / out-of-tile targets never match
    picked = jnp.where(hit, probs, jnp.float32(0.0))     # select, never -inf*0

    if aligned:
        # Pure vreg-wise folds; defer the final cross-lane/sublane reduce to
        # the wrapper.  Reshape splits the leading dim at an 8-row boundary
        # (no relayout); lane groups are folded with static tile-aligned slices.
        acc8 = jnp.sum(picked.reshape(row_tile // 8, 8, v_tile), axis=0)  # (8, v_tile)
        acc = acc8[:, 0:128]
        for c in range(128, v_tile, 128):
            acc = acc + acc8[:, c:c + 128]
        out_ref[...] += acc                              # (8, 128) vreg adds
    else:
        # Tiny / ragged tiles (v_tile not a multiple of 128): full reduce into
        # the [0, 0] corner so the wrapper's total jnp.sum stays correct.
        corner = ((jax.lax.broadcasted_iota(jnp.int32, (8, 128), 0) == 0)
                  & (jax.lax.broadcasted_iota(jnp.int32, (8, 128), 1) == 0))
        out_ref[...] += jnp.where(corner, jnp.sum(picked), jnp.float32(0.0))


def _target_tile_bytes():
    """Per-generation probs-buffer size (double-buffered by Pallas)."""
    try:
        kind = jax.devices()[0].device_kind.lower()
    except Exception:  # pragma: no cover - defensive
        kind = ""
    if "v7" in kind:
        return 8 << 20   # 3.2 TB/s HBM: amortize per-step cost; fits 64 MiB VMEM
    return 4 << 20       # v5e/v6e: stay inside default scoped VMEM comfortably


def custom_loss(seq_probs, target, lengths, *, row_tile=None, v_tile=None):
    """seq_probs: (B, S, V) log-probs (f32 or bf16); target: (B, S) int;
    lengths: (B,) int. Returns scalar avg loss (f32)."""
    B, S, V = seq_probs.shape
    rows = B * S
    itemsize = jnp.dtype(seq_probs.dtype).itemsize

    # Keep seq_probs in its native dtype; reshape is layout-free.
    probs2d = seq_probs.reshape(rows, V)

    # Fold the valid-time mask (t < lengths[b]-1) into the targets: invalid -> -1.
    t_iota = jnp.arange(S, dtype=jnp.int32)[None, :]
    valid = t_iota < (lengths.astype(jnp.int32)[:, None] - 1)
    tgt_masked = jnp.where(valid, target.astype(jnp.int32), -1).reshape(rows, 1)

    # --- Tile selection.
    if row_tile is None:
        if rows < 8:
            row_tile = rows                      # single tiny tile
        else:
            # Multiple of 8, >= 2 row tiles when possible (v7x 2-TC split),
            # capped at 512 rows.
            half = ((pl.cdiv(rows, 2) + 7) // 8) * 8
            row_tile = min(512, max(8, half))
    if v_tile is None:
        if V % 128 == 0 and V > 128:
            target_bytes = _target_tile_bytes()
            v_tile = max(128, min(V, ((target_bytes // (row_tile * itemsize))
                                      // 128) * 128))
        else:
            v_tile = V                           # full (small / ragged) vocab

    n_row_tiles = pl.cdiv(rows, row_tile)
    n_v_tiles = pl.cdiv(V, v_tile)
    aligned = (row_tile % 8 == 0) and (v_tile % 128 == 0)

    # Pad targets to the full padded row count with -1 so garbage probs rows in
    # the last partial block can never match (no in-kernel row mask needed).
    padded_rows = n_row_tiles * row_tile
    if padded_rows > rows:
        tgt_masked = jnp.pad(tgt_masked, ((0, padded_rows - rows), (0, 0)),
                             constant_values=-1)

    kernel = functools.partial(_loss_kernel, aligned=aligned)

    partials = pl.pallas_call(
        kernel,
        out_shape=jax.ShapeDtypeStruct((n_row_tiles * 8, 128), jnp.float32),
        grid=(n_row_tiles, n_v_tiles),
        in_specs=[
            pl.BlockSpec((row_tile, v_tile), lambda i, j: (i, j)),   # seq_probs
            pl.BlockSpec((row_tile, 1), lambda i, j: (i, 0)),        # padded targets
        ],
        out_specs=pl.BlockSpec((8, 128), lambda i, j: (i, 0)),       # per-row-tile partial
        compiler_params=pltpu.CompilerParams(
            dimension_semantics=("parallel", "arbitrary"),
            vmem_limit_bytes=32 << 20),
        cost_estimate=pl.CostEstimate(
            flops=3 * rows * V,
            transcendentals=0,
            bytes_accessed=rows * V * itemsize + padded_rows * 4
                           + n_row_tiles * 8 * 128 * 4),
    )(probs2d, tgt_masked)

    total = jnp.sum(partials)          # final cross-lane/sublane reduce, out of the hot loop
    return -total / jnp.float32(B)


def custom_loss_ref(seq_probs, target, lengths):
    """Pure-JAX reference for sanity checking."""
    B, S, V = seq_probs.shape
    picked = jnp.take_along_axis(
        seq_probs.astype(jnp.float32), target[..., None].astype(jnp.int32),
        axis=-1)[..., 0]
    mask = jnp.arange(S)[None, :] < (lengths[:, None].astype(jnp.int32) - 1)
    return -jnp.sum(jnp.where(mask, picked, 0.0)) / jnp.float32(B)


if __name__ == "__main__":
    key = jax.random.PRNGKey(0)

    # --- Small test, f32, ragged vocab (B=2, S=8, V=32 as in the module spec).
    k1, k2, k3 = jax.random.split(key, 3)
    B, S, V = 2, 8, 32
    logits = jax.random.normal(k1, (B, S, V), dtype=jnp.float32)
    seq_probs = jax.nn.log_softmax(logits, axis=-1)
    target = jax.random.randint(k2, (B, S), 0, V, dtype=jnp.int32)
    lengths = jax.random.randint(k3, (B,), 2, S + 1, dtype=jnp.int32)

    loss = custom_loss(seq_probs, target, lengths)
    jax.block_until_ready(loss)
    ref = custom_loss_ref(seq_probs, target, lengths)
    assert jnp.allclose(loss, ref, rtol=1e-5, atol=1e-5), (loss, ref)

    # --- bf16 log-probs, multi-tile grid, last row tile partially out-of-bounds
    #     (rows=640 with row_tile=256 -> padded -1 targets cover the tail).
    k4, k5, k6 = jax.random.split(jax.random.PRNGKey(1), 3)
    B2, S2, V2 = 8, 80, 256
    logits2 = jax.random.normal(k4, (B2, S2, V2), dtype=jnp.float32)
    seq_probs2 = jax.nn.log_softmax(logits2, axis=-1).astype(jnp.bfloat16)
    target2 = jax.random.randint(k5, (B2, S2), 0, V2, dtype=jnp.int32)
    lengths2 = jax.random.randint(k6, (B2,), 2, S2 + 1, dtype=jnp.int32)

    loss2 = custom_loss(seq_probs2, target2, lengths2, row_tile=256, v_tile=128)
    jax.block_until_ready(loss2)
    ref2 = custom_loss_ref(seq_probs2, target2, lengths2)
    assert jnp.allclose(loss2, ref2, rtol=2e-3, atol=2e-3), (loss2, ref2)

    # --- Default tile selection, aligned path with multi-128 lane fold
    #     (rows=256 -> 2 parallel row tiles; V=512 -> v_tile=512, 4 lane groups).
    k7, k8, k9 = jax.random.split(jax.random.PRNGKey(2), 3)
    B3, S3, V3 = 4, 64, 512
    logits3 = jax.random.normal(k7, (B3, S3, V3), dtype=jnp.float32)
    seq_probs3 = jax.nn.log_softmax(logits3, axis=-1)
    target3 = jax.random.randint(k8, (B3, S3), 0, V3, dtype=jnp.int32)
    lengths3 = jax.random.randint(k9, (B3,), 2, S3 + 1, dtype=jnp.int32)

    loss3 = custom_loss(seq_probs3, target3, lengths3)
    jax.block_until_ready(loss3)
    ref3 = custom_loss_ref(seq_probs3, target3, lengths3)
    assert jnp.allclose(loss3, ref3, rtol=1e-5, atol=1e-5), (loss3, ref3)

    print("KERNEL_OK")
</pallas_src>

<mosaic_0001>
module attributes {stable_mosaic.version = 11 : i64} {
  func.func @_loss_kernel(%arg0: i32, %arg1: i32, %arg2: memref<8x32xf32, #tpu.memory_space<vmem>>, %arg3: memref<8x1xi32, #tpu.memory_space<vmem>>, %arg4: memref<8x128xf32, #tpu.memory_space<vmem>>) attributes {dimension_semantics = [#tpu.dimension_semantics<parallel>, #tpu.dimension_semantics<arbitrary>], iteration_bounds = array<i64: 2, 1>, scalar_prefetch = 0 : i64, scratch_operands = 0 : i64, tpu.core_type = #tpu.core_type<tc>, window_params = [{transform_indices = @transform_0, window_bounds = array<i64: 8, 32>}, {transform_indices = @transform_1, window_bounds = array<i64: 8, 1>}, {transform_indices = @transform_2, window_bounds = array<i64: 8, 128>}]} {
    %c0_i32 = arith.constant 0 : i32
    %0 = arith.cmpi eq, %arg1, %c0_i32 : i32
    %1 = arith.extui %0 : i1 to i32
    %c0_i32_0 = arith.constant 0 : i32
    %2 = arith.cmpi ne, %1, %c0_i32_0 : i32
    scf.if %2 {
      %cst_12 = arith.constant 0.000000e+00 : f32
      %30 = vector.broadcast %cst_12 : f32 to vector<8x128xf32>
      %c0_13 = arith.constant 0 : index
      %c0_14 = arith.constant 0 : index
      %31 = vector.load %arg4[%c0_13, %c0_14] : memref<8x128xf32, #tpu.memory_space<vmem>>, vector<8x128xf32>
      tpu.vector_store %arg4[%c0_13, %c0_14], %30 {strides = array<i32>} : memref<8x128xf32, #tpu.memory_space<vmem>>, vector<8x128xf32>,
    } else {
    }
    %c0 = arith.constant 0 : index
    %c0_1 = arith.constant 0 : index
    %3 = vector.load %arg2[%c0, %c0_1] : memref<8x32xf32, #tpu.memory_space<vmem>>, vector<8x32xf32>
    %c0_2 = arith.constant 0 : index
    %c0_3 = arith.constant 0 : index
    %4 = vector.load %arg3[%c0_2, %c0_3] : memref<8x1xi32, #tpu.memory_space<vmem>>, vector<8x1xi32>
    %c32_i32 = arith.constant 32 : i32
    %5 = arith.muli %arg1, %c32_i32 : i32
    %6 = vector.broadcast %5 : i32 to vector<8x1xi32>
    %7 = arith.subi %4, %6 : vector<8x1xi32>
    %8 = tpu.iota {dimensions = array<i32: 1>} : vector<8x32xi32>
    %9 = vector.broadcast %7 : vector<8x1xi32> to vector<8x32xi32>
    %10 = arith.cmpi eq, %8, %9 : vector<8x32xi32>
    %cst = arith.constant 0.000000e+00 : f32
    %11 = vector.broadcast %cst : f32 to vector<8x32xf32>
    %12 = arith.select %10, %3, %11 : vector<8x32xi1>, vector<8x32xf32>
    %13 = tpu.iota {dimensions = array<i32: 0>} : vector<8x128xi32>
    %c0_i32_4 = arith.constant 0 : i32
    %14 = vector.broadcast %c0_i32_4 : i32 to vector<8x128xi32>
    %15 = arith.cmpi eq, %13, %14 : vector<8x128xi32>
    %16 = tpu.iota {dimensions = array<i32: 1>} : vector<8x128xi32>
    %c0_i32_5 = arith.constant 0 : i32
    %17 = vector.broadcast %c0_i32_5 : i32 to vector<8x128xi32>
    %18 = arith.cmpi eq, %16, %17 : vector<8x128xi32>
    %19 = arith.andi %15, %18 : vector<8x128xi1>
    %c0_6 = arith.constant 0 : index
    %c0_7 = arith.constant 0 : index
    %20 = vector.load %arg4[%c0_6, %c0_7] : memref<8x128xf32, #tpu.memory_space<vmem>>, vector<8x128xf32>
    %21 = vector.shape_cast %12 : vector<8x32xf32> to vector<1x8x32xf32>
    %cst_8 = arith.constant dense<0.000000e+00> : vector<1xf32>
    %22 = vector.multi_reduction <add>, %21, %cst_8 [1, 2] : vector<1x8x32xf32> to vector<1xf32>
    %23 = vector.shape_cast %22 : vector<1xf32> to vector<1x1x1xf32>
    %24 = vector.extract %23[0, 0, 0] : f32 from vector<1x1x1xf32>
    %cst_9 = arith.constant 0.000000e+00 : f32
    %25 = vector.broadcast %24 : f32 to vector<8x128xf32>
    %26 = vector.broadcast %cst_9 : f32 to vector<8x128xf32>
    %27 = arith.select %19, %25, %26 : vector<8x128xi1>, vector<8x128xf32>
    %28 = arith.addf %20, %27 : vector<8x128xf32>
    %c0_10 = arith.constant 0 : index
    %c0_11 = arith.constant 0 : index
    %29 = vector.load %arg4[%c0_10, %c0_11] : memref<8x128xf32, #tpu.memory_space<vmem>>, vector<8x128xf32>
    tpu.vector_store %arg4[%c0_10, %c0_11], %28 {strides = array<i32>} : memref<8x128xf32, #tpu.memory_space<vmem>>, vector<8x128xf32>,
    return
  }
  func.func @transform_0(%arg0: i32, %arg1: i32) -> (i32, i32) {
    %c0_i32 = arith.constant 0 : i32
    return %arg0, %arg1 : i32, i32
  }
  func.func @transform_1(%arg0: i32, %arg1: i32) -> (i32, i32) {
    %c0_i32 = arith.constant 0 : i32
    %c0_i32_0 = arith.constant 0 : i32
    return %arg0, %c0_i32 : i32, i32
  }
  func.func @transform_2(%arg0: i32, %arg1: i32) -> (i32, i32) {
    %c0_i32 = arith.constant 0 : i32
    %c0_i32_0 = arith.constant 0 : i32
    return %arg0, %c0_i32 : i32, i32
  }
}

</mosaic_0001>

<bundles_post_ra>
// kernel: tpu_custom_call.1
= control target key start
LH: loop header
LB: loop body
LE: loop exit
PB: predicated region body
PF: predicated region fallthrough
CT: control target
= control target key end

     0   :  { %7 = vsyncpa [#allocation3], 0  ;;  %s582_s0 = inlined_call_operand.vmem [shape: f32[16,32], index: 0, kind: input, shape index: {}]   ;;  %s583_s1 = inlined_call_operand.vmem [shape: s32[16,1], index: 1, kind: input, shape index: {}]   ;;  %s584_s2 = inlined_call_operand.hbm [shape: f32[16,128], index: 2, kind: output, shape index: {}]  }
   0x1   :  { %9 = vsyncpa [#allocation3 + $0x1], 0  ;;  %s480_s9 = smov 0   ;;  %s482_s10 = smov 0  }
   0x2   :  { %s484_s11 = smov 0   ;;  %s486_s12 = smov 0  }
   0x3   :  { %s488_s13 = smov 0   ;;  %s490_s14 = smov 0  }
   0x4 LB: > { %s313_s15 = sadd.s32 4294967295, %s461_s14   ;;  %s314_s16 = sadd.s32 4294967294, %s461_s14   ;;  %s461_s14 = sphi %s490_s14, %s15_s14   ;;  %s457_s13 = sphi %s488_s13, %s591_s13   ;;  %s453_s12 = sphi %s486_s12, %s590_s12   ;;  %s449_s11 = sphi %s484_s11, %s589_s11   ;;  %s445_s10 = sphi %s482_s10, %s588_s10   ;;  %s441_s9 = sphi %s480_s9, %s587_s9  }
   0x5   : > { %s27_s17 = sadd.s32 1, %s457_s13  ;;  %s88_s18 = sadd.s32 1, %s449_s11 }
   0x6   : > { %p29_p0 = scmp.ge.s32.totalorder %s27_s17, 2  ;;  %p98_p1 = scmp.ne.s32.totalorder %s449_s11, %s445_s10 }
   0x7   : > { %p99_p2 = scmp.eq.s32.totalorder %s313_s15, 1  ;;  %p104_p3 = scmp.ne.s32.totalorder %s445_s10, %s441_s9 }
   0x8   : > { %s593_s17 = smov (%p29_p0, %s27_s17), 0  ;;  %p105_p5 = scmp.eq.s32.totalorder %s314_s16, 1 }
   0x9   : > { %p520_p4 = por %p99_p2, %p98_p1  ;;  %s85_s20 = ssub.s32 %s457_s13, %s593_s17 }
   0xa   : > { %p317_p6 = scmp.ge.s32.totalorder %s461_s14, 1  ;;  %p86_p7 = scmp.eq.s32.totalorder %s85_s20, 0 }
   0xb   : > { %p527_p8 = por %p105_p5, %p104_p3  ;;  %p140_p9 = scmp.lt.s32.totalorder %s461_s14, 3 }
   0xc   : > { %s533_s22 = scalar_select %p86_p7, %s449_s11, %s88_s18  }
   0xd   : > { %p141_p10 = pnand %p317_p6, %p140_p9 }
   0xe   : > { %p168_p11 = scmp.lt.s32.totalorder (!%p141_p10), %s453_s12, 1  ;;  %s165_s3 = sand.u32 (!%p141_p10), 1, %s445_s10  }
   0xf   : > { %144 = sbr.rel (%p141_p10) target bundleno = 367 (0x16f), region = 28  ;;  %s318_s4 = sshll.u32 (!%p141_p10), %s165_s3, 3 }
  0x10   : > { %s322_s5 = sshll.u32 (!%p141_p10), %s453_s12, 7  ;;  %s167_s7 = scalar_lea.vmem (!%p141_p10), [#allocation2], %s318_s4 }
  0x11   : > { %s231_s8 = sshll.u32 (!%p141_p10), %s167_s7, 4  ;;  %s229_s18 = scalar_lea.hbm (!%p141_p10), %s584_s2, %s322_s5  ;;  %s232_s8 = int_to_ptr.vmem [resolvable:$true] %s231_s8 }
  0x12   : > { %s218_s20 = scalar_lea.sflag (!%p141_p10), [#allocation3], %s165_s3 }
  0x14   : > { %v463_v0 = vmov 0   ;;  %s169_s23 = scalar_select %p168_p11, %s453_s12, 1  ;;  %v189_v2 = vlaneseq  ;;  %vm202_vm0 = vcmask 261120  }
  0x15   : > { %384 = vset.pattern.permute.xlu0 %v463_v0 }
  0x16   : > { %s319_s24 = sshll.u32 %s169_s23, 3  ;;  %v190_v3 = vand.u32 127, %v189_v2  ;;  %v197_v15 = vshrl.u32 %v189_v2, 7  ;;  %s385_s23 = scalar_lea.vmem %s232_s8, 128 }
  0x17   : > { %s178_s27 = scalar_lea.vmem %s583_s1, %s319_s24  ;;  %s174_s30 = scalar_lea.vmem %s582_s0, %s319_s24 }
  0x18   : > { %v185_v1 = vld [vmem:[%s178_s27] sm:$0xff]  ;;  %vm198_vm2 = vcmp.eq.s32.totalorder %v197_v15, 0  ;;  %vm199_vm3 = vcmp.eq.s32.totalorder %v190_v3, 0  ;;  %p386_p12 = scmp.ne.s32.totalorder %s232_s8, %s385_s23  ;;  %s464_s24 = smov [#allocation2]  }
  0x19   : > { %192 = vperm.xlu0 %384, %v185_v1   ;;  %v184_v4 = vld [vmem:[%s174_s30] sm:$0xff]  ;;  %vm200_vm4 = vmand %vm198_vm2, %vm199_vm3  ;;  %s389_s25 = sshll.u32 %s464_s24, 4  ;;  %s390_s25 = int_to_ptr.vmem [resolvable:$false] %s389_s25 }
  0x1a   : > { %p387_p13 = pnand %p386_p12, %p520_p4  ;;  %s391_s12 = scalar_lea.vmem %s390_s25, 256 }
  0x1b   : > { %p392_p1 = scmp.lt.s32.totalorder %s232_s8, %s390_s25  ;;  %p393_p2 = scmp.lt.s32.totalorder %s391_s12, %s385_s23 }
  0x1c   : > { %p388_p0 = pneg %p387_p13 }
  0x1d   : > { %p394_p3 = por %p393_p2, %p392_p1 }
  0x1f   : > { %p395_p5 = pnand %p394_p3, %p388_p0 }
  0x94   : > { %v193_v5 = vpop.permute.xlu0 %192 }
  0x95   : > { %vm194_vm1 = vcmp.eq.s32.totalorder %v190_v3, %v193_v5 }
  0x96   : > { %v195_v6 = vsel %vm194_vm1, %v184_v4, 0.0 }
  0x97   : > { %v203_v7 = vsel %vm202_vm0, %v195_v6, 0.0 }
  0x98   : > { %204 = vadd.xlane.f32.xlu0 %v203_v7 }
 0x121   : > { %v205_v8 = vpop.xlane.xlu0 %204 }
 0x122   : > { %v206_v9 = vrot.slane %v205_v8, 4 }
 0x124   : > { %v207_v10 = vadd.f32 %v206_v9, %v205_v8 }
 0x126   : > { %v208_v11 = vrot.slane %v207_v10, 2 }
 0x128   : > { %v209_v12 = vadd.f32 %v208_v11, %v207_v10 }
 0x12a   : > { %v210_v13 = vrot.slane %v209_v12, 1 }
 0x12c   : > { %v211_v14 = vadd.f32 %v210_v13, %v209_v12 }
 0x12e   : > { %325 = vpush %v211_v14 }
 0x15f   : > { %s326_s6 = spop %325 }
 0x160   : > { %v213_v16 = vstv %s326_s6 }
 0x161   : > { %v214_v17 = vsel %vm200_vm4, %v213_v16, 0.0 }
 0x162   : > { %216 = vst [vmem:[%s167_s7] sm:$0xff] %v214_v17 }
 0x163   : > { %398 = shalt.err (!%p395_p5)
}
 0x164   : > { %s399_s26 = scalar_lea.hbm %s229_s18, 128  ;;  %s403_s29 = scalar_lea.hbm %s584_s2, 256 }
 0x165   : > { %p400_p6 = scmp.ne.s32.totalorder %s229_s18, %s399_s26  ;;  %p404_p10 = scmp.lt.s32.totalorder %s229_s18, %s584_s2 }
 0x166   : > { %p405_p11 = scmp.lt.s32.totalorder %s403_s29, %s399_s26 }
 0x167   : > { %p401_p7 = pnand %p400_p6, %p520_p4 }
 0x168   : > { %p406_p12 = por %p405_p11, %p404_p10 }
 0x169   : > { %p402_p9 = pneg %p401_p7 }
 0x16b   : > { %p407_p13 = pnand %p406_p12, %p402_p9 }
 0x16d   : > { %410 = shalt.err (!%p407_p13)
}
 0x16e   : > { %327 = dma.vmem_to_hbm [thread:$0]  (%p520_p4), %s232_s8, 128, %s229_s18, %s218_s20  }
 0x16f PF: > { %p333_p0 = scmp.ge.s32.totalorder %s461_s14, 2  ;;  %s243_s4 = sand.u32 1, %s441_s9  }
 0x170   : > { %s244_s5 = scalar_lea.sflag [#allocation3], %s243_s4 }
 0x171   : > { %p330_p1 = pnand %p333_p0, %p527_p8 }
 0x173   : > { %p331_p2 = pneg %p330_p1 }
 0x175   : > { %436 = dma.done.wait (%p331_p2), %s244_s5, 128  }
 0x176   : > { %438 = vsyncadd (%p331_p2), %s244_s5, 4294967168  ;;  %s15_s14 = sadd.s32 1, %s461_s14   ;;  %s587_s9 = smov %s445_s10 }
 0x177   : > { %p12_p3 = scmp.ge.s32.totalorder %s15_s14, 4   ;;  %s588_s10 = smov %s449_s11 }
 0x178   : > { %s589_s11 = smov %s533_s22  ;;  %s590_s12 = smov %s457_s13 }
 0x179   : > { %s591_s13 = smov %s593_s17  ;;  %14 = sbr.rel (!%p12_p3) target bundleno = 4 (0x4), region = 70 }
 0x17e   :  { %249 = vsyncpa [#allocation3], 1 }
 0x17f   :  { %251 = vsyncpa [#allocation3 + $0x1], 1 }

</bundles_post_ra>
